<compile_context>
chip_gen: v6e
topology: v6e:2x2x1
jax: 0.10.0
libtpu: 0.0.40
codegen_flags: <defaults>
</compile_context>

<pallas_src>
import jax
import jax.numpy as jnp
from jax.experimental import pallas as pl
from jax.experimental.pallas import tpu as pltpu


def _round_up(x, m):
    return ((x + m - 1) // m) * m


def _vmem_limit_bytes():
    # ~80% of physical VMEM: v5e/v6e (128 MiB) -> ~102 MiB, v7x (64 MiB/TC)
    # -> ~51 MiB.  Fallback (64 MiB basis) is safe on every generation and
    # still above the 16/32 MiB default scoped limits.
    try:
        phys = int(pltpu.get_tpu_info().vmem_capacity_bytes)
    except Exception:
        phys = 64 * 1024 * 1024
    return min(int(phys * 0.8), 110 * 1024 * 1024)


def _mlp_kernel(x_ref, w1_ref, b1_ref, w2_ref, b2_ref,
                w3_ref, b3_ref, w4_ref, b4_ref, o_ref):
    # fc1 -> relu (dropout == identity in eval mode)
    x = x_ref[...].astype(jnp.bfloat16)            # cast in-kernel, no HBM pass
    h = jnp.dot(x, w1_ref[...], preferred_element_type=jnp.float32)
    h = jnp.maximum(h + b1_ref[...], 0.0).astype(jnp.bfloat16)
    # fc2 -> relu
    h = jnp.dot(h, w2_ref[...], preferred_element_type=jnp.float32)
    h = jnp.maximum(h + b2_ref[...], 0.0).astype(jnp.bfloat16)
    # fc3 -> relu  (output lane-padded to 128; pad cols are exactly 0)
    h = jnp.dot(h, w3_ref[...], preferred_element_type=jnp.float32)
    h = jnp.maximum(h + b3_ref[...], 0.0).astype(jnp.bfloat16)
    # fc4 (no activation; output lane-padded to multiple of 128)
    h = jnp.dot(h, w4_ref[...], preferred_element_type=jnp.float32)
    o_ref[...] = (h + b4_ref[...]).astype(o_ref.dtype)


def mlp_classifier_forward(x, params, *, block_b=1024):
    """x: (B, input_size) float32; params: (in,out) weights + (1,out) biases (f32)."""
    B, in_features = x.shape
    out_size = params["w4"].shape[1]
    h3 = params["w3"].shape[1]            # 64

    # ---- lane-dense zero-padding of narrow trailing dims (numerically exact) ----
    h3_pad = _round_up(h3, 128)           # 64  -> 128
    out_pad = _round_up(out_size, 128)    # e.g. 10 -> 128
    w3 = jnp.pad(params["w3"], ((0, 0), (0, h3_pad - h3)))
    b3 = jnp.pad(params["b3"], ((0, 0), (0, h3_pad - h3)))
    w4 = jnp.pad(params["w4"], ((0, h3_pad - h3), (0, out_pad - out_size)))
    b4 = jnp.pad(params["b4"], ((0, 0), (0, out_pad - out_size)))

    # ---- bf16 matmul weights, f32 biases (bias-add / ReLU math stays f32) ----
    w1 = params["w1"].astype(jnp.bfloat16)
    w2 = params["w2"].astype(jnp.bfloat16)
    w3 = w3.astype(jnp.bfloat16)
    w4 = w4.astype(jnp.bfloat16)
    b1, b2 = params["b1"], params["b2"]

    # ---- batch tiling: tb multiple of 16 (bf16 sublanes), up to block_b; no
    # wrapper-side pad — the ragged last block is masked by Pallas.          ----
    tb = min(block_b, _round_up(B, 16))
    grid = (pl.cdiv(B, tb),)

    def resident(a):
        # Constant index_map -> no re-DMA across grid steps.  (pl.Buffered(1)
        # would also halve the resident double-buffer, but at <1 MiB of bf16
        # weights the saving is negligible, so it is omitted for robustness.)
        return pl.BlockSpec(a.shape, lambda i: (0, 0))

    out = pl.pallas_call(
        _mlp_kernel,
        out_shape=jax.ShapeDtypeStruct((B, out_pad), jnp.float32),
        grid=grid,
        in_specs=[
            pl.BlockSpec((tb, in_features), lambda i: (i, 0)),
            resident(w1), resident(b1),
            resident(w2), resident(b2),
            resident(w3), resident(b3),
            resident(w4), resident(b4),
        ],
        out_specs=pl.BlockSpec((tb, out_pad), lambda i: (i, 0)),
        compiler_params=pltpu.CompilerParams(
            dimension_semantics=("parallel",),
            vmem_limit_bytes=_vmem_limit_bytes()),
    )(x, w1, b1, w2, b2, w3, b3, w4, b4)

    return out[:, :out_size]


def init_params(key, input_size, output_size):
    """Deterministic init mirroring nn.Linear shapes (weights stored as (in, out))."""
    dims = [(input_size, 1024), (1024, 256), (256, 64), (64, output_size)]
    params = {}
    for i, (fan_in, fan_out) in enumerate(dims, start=1):
        key, kw, kb = jax.random.split(key, 3)
        bound = 1.0 / jnp.sqrt(fan_in)
        params[f"w{i}"] = jax.random.uniform(
            kw, (fan_in, fan_out), jnp.float32, -bound, bound)
        params[f"b{i}"] = jax.random.uniform(
            kb, (1, fan_out), jnp.float32, -bound, bound)
    return params


def _reference_forward(x, params):
    # Mirrors the kernel's numerics: bf16 matmul inputs, f32 accumulation,
    # bf16-rounded inter-layer activations.
    def bf(a):
        return a.astype(jnp.bfloat16).astype(jnp.float32)
    h = jnp.maximum(bf(x) @ bf(params["w1"]) + params["b1"], 0.0)
    h = jnp.maximum(bf(h) @ bf(params["w2"]) + params["b2"], 0.0)
    h = jnp.maximum(bf(h) @ bf(params["w3"]) + params["b3"], 0.0)
    return bf(h) @ bf(params["w4"]) + params["b4"]


if __name__ == "__main__":
    key = jax.random.PRNGKey(0)
    input_size, output_size = 32, 10

    key, kx, kp = jax.random.split(key, 3)
    params = init_params(kp, input_size, output_size)

    # Small batch: single (partial) block, grid=(1,).
    x = jax.random.normal(kx, (8, input_size), jnp.float32)
    out = jax.block_until_ready(mlp_classifier_forward(x, params))
    ref = _reference_forward(x, params)
    assert out.shape == (8, output_size)
    assert jnp.allclose(out, ref, atol=1e-2, rtol=1e-2), "mismatch vs reference (B=8)"

    # Multi-step grid with a ragged last block (exercises the no-pad batch path).
    key, kx2 = jax.random.split(key)
    x2 = jax.random.normal(kx2, (40, input_size), jnp.float32)
    out2 = jax.block_until_ready(mlp_classifier_forward(x2, params, block_b=16))
    ref2 = _reference_forward(x2, params)
    assert out2.shape == (40, output_size)
    assert jnp.allclose(out2, ref2, atol=1e-2, rtol=1e-2), "mismatch vs reference (B=40)"

    print("KERNEL_OK")
</pallas_src>

<mosaic_0001>
module attributes {stable_mosaic.version = 11 : i64} {
  func.func @_mlp_kernel(%arg0: i32, %arg1: memref<16x32xf32, #tpu.memory_space<vmem>>, %arg2: memref<32x1024xbf16, #tpu.memory_space<vmem>>, %arg3: memref<1x1024xf32, #tpu.memory_space<vmem>>, %arg4: memref<1024x256xbf16, #tpu.memory_space<vmem>>, %arg5: memref<1x256xf32, #tpu.memory_space<vmem>>, %arg6: memref<256x128xbf16, #tpu.memory_space<vmem>>, %arg7: memref<1x128xf32, #tpu.memory_space<vmem>>, %arg8: memref<128x128xbf16, #tpu.memory_space<vmem>>, %arg9: memref<1x128xf32, #tpu.memory_space<vmem>>, %arg10: memref<16x128xf32, #tpu.memory_space<vmem>>) attributes {dimension_semantics = [#tpu.dimension_semantics<parallel>], iteration_bounds = array<i64: 1>, scalar_prefetch = 0 : i64, scratch_operands = 0 : i64, tpu.core_type = #tpu.core_type<tc>, window_params = [{transform_indices = @transform_0, window_bounds = array<i64: 16, 32>}, {pipeline_mode = #tpu.pipeline_mode<synchronous>, transform_indices = @transform_1, window_bounds = array<i64: 32, 1024>}, {pipeline_mode = #tpu.pipeline_mode<synchronous>, transform_indices = @transform_2, window_bounds = array<i64: 1, 1024>}, {pipeline_mode = #tpu.pipeline_mode<synchronous>, transform_indices = @transform_3, window_bounds = array<i64: 1024, 256>}, {pipeline_mode = #tpu.pipeline_mode<synchronous>, transform_indices = @transform_4, window_bounds = array<i64: 1, 256>}, {pipeline_mode = #tpu.pipeline_mode<synchronous>, transform_indices = @transform_5, window_bounds = array<i64: 256, 128>}, {pipeline_mode = #tpu.pipeline_mode<synchronous>, transform_indices = @transform_6, window_bounds = array<i64: 1, 128>}, {pipeline_mode = #tpu.pipeline_mode<synchronous>, transform_indices = @transform_7, window_bounds = array<i64: 128, 128>}, {pipeline_mode = #tpu.pipeline_mode<synchronous>, transform_indices = @transform_8, window_bounds = array<i64: 1, 128>}, {transform_indices = @transform_9, window_bounds = array<i64: 16, 128>}]} {
    %c0 = arith.constant 0 : index
    %c0_0 = arith.constant 0 : index
    %0 = vector.load %arg1[%c0, %c0_0] : memref<16x32xf32, #tpu.memory_space<vmem>>, vector<16x32xf32>
    %1 = arith.truncf %0 : vector<16x32xf32> to vector<16x32xbf16>
    %c0_1 = arith.constant 0 : index
    %c0_2 = arith.constant 0 : index
    %2 = vector.load %arg2[%c0_1, %c0_2] : memref<32x1024xbf16, #tpu.memory_space<vmem>>, vector<32x1024xbf16>
    %cst = arith.constant dense<0.000000e+00> : vector<16x1024xf32>
    %3 = tpu.matmul %1, %2, %cst {dimension_numbers = #tpu.dot_dimension_numbers<[1], [0], [0], [1], [0, 0, 1, 1], [], []>} : vector<16x32xbf16>, vector<32x1024xbf16>, vector<16x1024xf32> -> vector<16x1024xf32>
    %c0_3 = arith.constant 0 : index
    %c0_4 = arith.constant 0 : index
    %4 = vector.load %arg3[%c0_3, %c0_4] : memref<1x1024xf32, #tpu.memory_space<vmem>>, vector<1x1024xf32>
    %5 = vector.broadcast %4 : vector<1x1024xf32> to vector<16x1024xf32>
    %6 = arith.addf %3, %5 : vector<16x1024xf32>
    %cst_5 = arith.constant 0.000000e+00 : f32
    %7 = vector.broadcast %cst_5 : f32 to vector<16x1024xf32>
    %8 = arith.maximumf %6, %7 : vector<16x1024xf32>
    %9 = arith.truncf %8 : vector<16x1024xf32> to vector<16x1024xbf16>
    %c0_6 = arith.constant 0 : index
    %c0_7 = arith.constant 0 : index
    %10 = vector.load %arg4[%c0_6, %c0_7] : memref<1024x256xbf16, #tpu.memory_space<vmem>>, vector<1024x256xbf16>
    %cst_8 = arith.constant dense<0.000000e+00> : vector<16x256xf32>
    %11 = tpu.matmul %9, %10, %cst_8 {dimension_numbers = #tpu.dot_dimension_numbers<[1], [0], [0], [1], [0, 0, 1, 1], [], []>} : vector<16x1024xbf16>, vector<1024x256xbf16>, vector<16x256xf32> -> vector<16x256xf32>
    %c0_9 = arith.constant 0 : index
    %c0_10 = arith.constant 0 : index
    %12 = vector.load %arg5[%c0_9, %c0_10] : memref<1x256xf32, #tpu.memory_space<vmem>>, vector<1x256xf32>
    %13 = vector.broadcast %12 : vector<1x256xf32> to vector<16x256xf32>
    %14 = arith.addf %11, %13 : vector<16x256xf32>
    %cst_11 = arith.constant 0.000000e+00 : f32
    %15 = vector.broadcast %cst_11 : f32 to vector<16x256xf32>
    %16 = arith.maximumf %14, %15 : vector<16x256xf32>
    %17 = arith.truncf %16 : vector<16x256xf32> to vector<16x256xbf16>
    %c0_12 = arith.constant 0 : index
    %c0_13 = arith.constant 0 : index
    %18 = vector.load %arg6[%c0_12, %c0_13] : memref<256x128xbf16, #tpu.memory_space<vmem>>, vector<256x128xbf16>
    %cst_14 = arith.constant dense<0.000000e+00> : vector<16x128xf32>
    %19 = tpu.matmul %17, %18, %cst_14 {dimension_numbers = #tpu.dot_dimension_numbers<[1], [0], [0], [1], [0, 0, 1, 1], [], []>} : vector<16x256xbf16>, vector<256x128xbf16>, vector<16x128xf32> -> vector<16x128xf32>
    %c0_15 = arith.constant 0 : index
    %c0_16 = arith.constant 0 : index
    %20 = vector.load %arg7[%c0_15, %c0_16] : memref<1x128xf32, #tpu.memory_space<vmem>>, vector<1x128xf32>
    %21 = vector.broadcast %20 : vector<1x128xf32> to vector<16x128xf32>
    %22 = arith.addf %19, %21 : vector<16x128xf32>
    %cst_17 = arith.constant 0.000000e+00 : f32
    %23 = vector.broadcast %cst_17 : f32 to vector<16x128xf32>
    %24 = arith.maximumf %22, %23 : vector<16x128xf32>
    %25 = arith.truncf %24 : vector<16x128xf32> to vector<16x128xbf16>
    %c0_18 = arith.constant 0 : index
    %c0_19 = arith.constant 0 : index
    %26 = vector.load %arg8[%c0_18, %c0_19] : memref<128x128xbf16, #tpu.memory_space<vmem>>, vector<128x128xbf16>
    %cst_20 = arith.constant dense<0.000000e+00> : vector<16x128xf32>
    %27 = tpu.matmul %25, %26, %cst_20 {dimension_numbers = #tpu.dot_dimension_numbers<[1], [0], [0], [1], [0, 0, 1, 1], [], []>} : vector<16x128xbf16>, vector<128x128xbf16>, vector<16x128xf32> -> vector<16x128xf32>
    %c0_21 = arith.constant 0 : index
    %c0_22 = arith.constant 0 : index
    %28 = vector.load %arg9[%c0_21, %c0_22] : memref<1x128xf32, #tpu.memory_space<vmem>>, vector<1x128xf32>
    %29 = vector.broadcast %28 : vector<1x128xf32> to vector<16x128xf32>
    %30 = arith.addf %27, %29 : vector<16x128xf32>
    %c0_23 = arith.constant 0 : index
    %c0_24 = arith.constant 0 : index
    %31 = vector.load %arg10[%c0_23, %c0_24] : memref<16x128xf32, #tpu.memory_space<vmem>>, vector<16x128xf32>
    tpu.vector_store %arg10[%c0_23, %c0_24], %30 {strides = array<i32>} : memref<16x128xf32, #tpu.memory_space<vmem>>, vector<16x128xf32>,
    return
  }
  func.func @transform_0(%arg0: i32) -> (i32, i32) {
    %c0_i32 = arith.constant 0 : i32
    %c0_i32_0 = arith.constant 0 : i32
    return %arg0, %c0_i32 : i32, i32
  }
  func.func @transform_1(%arg0: i32) -> (i32, i32) {
    %c0_i32 = arith.constant 0 : i32
    %c0_i32_0 = arith.constant 0 : i32
    %c0_i32_1 = arith.constant 0 : i32
    return %c0_i32, %c0_i32_0 : i32, i32
  }
  func.func @transform_2(%arg0: i32) -> (i32, i32) {
    %c0_i32 = arith.constant 0 : i32
    %c0_i32_0 = arith.constant 0 : i32
    %c0_i32_1 = arith.constant 0 : i32
    return %c0_i32, %c0_i32_0 : i32, i32
  }
  func.func @transform_3(%arg0: i32) -> (i32, i32) {
    %c0_i32 = arith.constant 0 : i32
    %c0_i32_0 = arith.constant 0 : i32
    %c0_i32_1 = arith.constant 0 : i32
    return %c0_i32, %c0_i32_0 : i32, i32
  }
  func.func @transform_4(%arg0: i32) -> (i32, i32) {
    %c0_i32 = arith.constant 0 : i32
    %c0_i32_0 = arith.constant 0 : i32
    %c0_i32_1 = arith.constant 0 : i32
    return %c0_i32, %c0_i32_0 : i32, i32
  }
  func.func @transform_5(%arg0: i32) -> (i32, i32) {
    %c0_i32 = arith.constant 0 : i32
    %c0_i32_0 = arith.constant 0 : i32
    %c0_i32_1 = arith.constant 0 : i32
    return %c0_i32, %c0_i32_0 : i32, i32
  }
  func.func @transform_6(%arg0: i32) -> (i32, i32) {
    %c0_i32 = arith.constant 0 : i32
    %c0_i32_0 = arith.constant 0 : i32
    %c0_i32_1 = arith.constant 0 : i32
    return %c0_i32, %c0_i32_0 : i32, i32
  }
  func.func @transform_7(%arg0: i32) -> (i32, i32) {
    %c0_i32 = arith.constant 0 : i32
    %c0_i32_0 = arith.constant 0 : i32
    %c0_i32_1 = arith.constant 0 : i32
    return %c0_i32, %c0_i32_0 : i32, i32
  }
  func.func @transform_8(%arg0: i32) -> (i32, i32) {
    %c0_i32 = arith.constant 0 : i32
    %c0_i32_0 = arith.constant 0 : i32
    %c0_i32_1 = arith.constant 0 : i32
    return %c0_i32, %c0_i32_0 : i32, i32
  }
  func.func @transform_9(%arg0: i32) -> (i32, i32) {
    %c0_i32 = arith.constant 0 : i32
    %c0_i32_0 = arith.constant 0 : i32
    return %arg0, %c0_i32 : i32, i32
  }
}

</mosaic_0001>

<bundles_post_ra>
// kernel: tpu_custom_call.1
= control target key start
LH: loop header
LB: loop body
LE: loop exit
PB: predicated region body
PF: predicated region fallthrough
CT: control target
= control target key end

     0   :  { %14 = vsyncpa [#allocation3], 0  ;;  %s2491_s0 = inlined_call_operand.hbm [shape: f32[8,32], index: 0, kind: input, shape index: {}]   ;;  %s2492_s1 = inlined_call_operand.hbm [shape: bf16[32,1024], index: 1, kind: input, shape index: {}]   ;;  %s2493_s2 = inlined_call_operand.hbm [shape: f32[1,1024], index: 2, kind: input, shape index: {}]   ;;  %s2494_s3 = inlined_call_operand.hbm [shape: bf16[1024,256], index: 3, kind: input, shape index: {}]   ;;  %s2495_s4 = inlined_call_operand.vmem [shape: f32[1,256], index: 4, kind: input, shape index: {}]   ;;  %s2496_s5 = inlined_call_operand.hbm [shape: bf16[256,128], index: 5, kind: input, shape index: {}]   ;;  %s2497_s6 = inlined_call_operand.vmem [shape: f32[1,128], index: 6, kind: input, shape index: {}]   ;;  %s2498_s7 = inlined_call_operand.hbm [shape: bf16[128,128], index: 7, kind: input, shape index: {}]   ;;  %s2499_s8 = inlined_call_operand.vmem [shape: f32[1,128], index: 8, kind: input, shape index: {}]   ;;  %s2500_s9 = inlined_call_operand.hbm [shape: f32[8,128], index: 9, kind: output, shape index: {}]  }
   0x1   :  { %15 = vsyncpa [#allocation6], 0 }
   0x2   :  { %16 = vsyncpa [#allocation9], 0 }
   0x3   :  { %17 = vsyncpa [#allocation12], 0 }
   0x4   :  { %18 = vsyncpa [#allocation4], 0 }
   0x5   :  { %23 = vsyncadd [#allocation3], 128  ;;  %s2333_s30 = smov [#allocation5]  }
   0x6   :  { %s36_s10 = sshll.u32 %s2333_s30, 4  ;;  %s37_s10 = int_to_ptr.vmem [resolvable:$true] %s36_s10 }
   0x7   :  { %s2191_s11 = scalar_lea.vmem %s37_s10, 2048  ;;  %p2196_p1 = scmp.lt.s32.totalorder %s37_s10, %s37_s10 }
   0x8   :  { %p2192_p0 = scmp.ne.s32.totalorder %s37_s10, %s2191_s11  ;;  %p2197_p2 = scmp.lt.s32.totalorder %s2191_s11, %s2191_s11 }
   0xa   :  { %p2198_p3 = por %p2197_p2, %p2196_p1 }
   0xc   :  { %p2199_p4 = pnand %p2198_p3, %p2192_p0 }
   0xe   :  { %2202 = shalt.err (!%p2199_p4)
}
   0xf   :  { %s2334_s12 = smov 512   ;;  %s2335_s13 = smov 32  }
  0x10   :  { %42 = dma.hbm_to_vmem [thread:$0]  %s2492_s1, 2048, %s37_s10, [#allocation6], %s2334_s12, %s2334_s12, %s2335_s13  }
  0x11   :  { %s2336_s16 = smov [#allocation8]   ;;  %s2337_s18 = smov [#allocation2]  }
  0x12   :  { %s58_s17 = sshll.u32 %s2336_s16, 4  ;;  %s24_s19 = sshll.u32 %s2337_s18, 4  ;;  %s59_s17 = int_to_ptr.vmem [resolvable:$true] %s58_s17  ;;  %s25_s19 = int_to_ptr.vmem [resolvable:$true] %s24_s19 }
  0x13   :  { %s2211_s20 = scalar_lea.vmem %s59_s17, 16384  ;;  %p2216_p6 = scmp.lt.s32.totalorder %s59_s17, %s59_s17 }
  0x14   :  { %p2212_p5 = scmp.ne.s32.totalorder %s59_s17, %s2211_s20  ;;  %p2217_p7 = scmp.lt.s32.totalorder %s2211_s20, %s2211_s20 }
  0x16   :  { %p2218_p8 = por %p2217_p7, %p2216_p6 }
  0x18   :  { %p2219_p9 = pnand %p2218_p8, %p2212_p5 }
  0x1a   :  { %2222 = shalt.err (!%p2219_p9)
}
  0x1b   :  { %s2338_s21 = smov 128   ;;  %s2339_s22 = smov 8  }
  0x1c   :  { %64 = dma.hbm_to_vmem [thread:$0]  %s2494_s3, 16384, %s59_s17, [#allocation9], %s2338_s21, %s2338_s21, %s2339_s22  }
  0x1d   :  { %s2231_s1 = scalar_lea.vmem %s25_s19, 128  ;;  %s2235_s25 = scalar_lea.vmem %s25_s19, 256 }
  0x1e   :  { %p2232_p10 = scmp.ne.s32.totalorder %s25_s19, %s2231_s1  ;;  %p2236_p11 = scmp.lt.s32.totalorder %s25_s19, %s25_s19 }
  0x1f   :  { %p2237_p12 = scmp.lt.s32.totalorder %s2235_s25, %s2231_s1 }
  0x21   :  { %p2238_p13 = por %p2237_p12, %p2236_p11 }
  0x23   :  { %p2239_p0 = pnand %p2238_p13, %p2232_p10 }
  0x25   :  { %2242 = shalt.err (!%p2239_p0)
}
  0x26   :  { %30 = dma.hbm_to_vmem [thread:$0]  %s2491_s0, 128, %s25_s19, [#allocation3], %s2338_s21, %s2338_s21, %s2339_s22  }
  0x27   :  { %s2340_s28 = smov [#allocation7]   ;;  %s2341_s3 = smov [#allocation10]  }
  0x28   :  { %s49_s29 = sshll.u32 %s2340_s28, 4  ;;  %s72_s30 = sshll.u32 %s2341_s3, 4  ;;  %s50_s29 = int_to_ptr.vmem [resolvable:$true] %s49_s29  ;;  %s73_s30 = int_to_ptr.vmem [resolvable:$true] %s72_s30 }
  0x29   :  { %s2251_s10 = scalar_lea.vmem %s50_s29, 128  ;;  %p2256_p2 = scmp.lt.s32.totalorder %s50_s29, %s50_s29 }
  0x2a   :  { %p2252_p1 = scmp.ne.s32.totalorder %s50_s29, %s2251_s10  ;;  %p2257_p3 = scmp.lt.s32.totalorder %s2251_s10, %s2251_s10 }
  0x2c   :  { %p2258_p4 = por %p2257_p3, %p2256_p2 }
  0x2e   :  { %p2259_p5 = pnand %p2258_p4, %p2252_p1 }
  0x30   :  { %2262 = shalt.err (!%p2259_p5)
}
  0x31   :  { %52 = dma.hbm_to_vmem [thread:$0]  %s2493_s2, 128, %s50_s29, [#allocation6]  }
  0x32   :  { %s2271_s13 = scalar_lea.vmem %s73_s30, 2048  ;;  %p2276_p7 = scmp.lt.s32.totalorder %s73_s30, %s73_s30 }
  0x33   :  { %p2272_p6 = scmp.ne.s32.totalorder %s73_s30, %s2271_s13  ;;  %p2277_p8 = scmp.lt.s32.totalorder %s2271_s13, %s2271_s13 }
  0x35   :  { %p2278_p9 = por %p2277_p8, %p2276_p7 }
  0x37   :  { %p2279_p10 = pnand %p2278_p9, %p2272_p6 }
  0x39   :  { %2282 = shalt.err (!%p2279_p10)
}
  0x3a   :  { %s2342_s0 = smov 64   ;;  %s2343_s14 = smov 4  }
  0x3b   :  { %78 = dma.hbm_to_vmem [thread:$0]  %s2496_s5, 2048, %s73_s30, [#allocation9], %s2342_s0, %s2342_s0, %s2343_s14  }
  0x3c   :  { %s2344_s17 = smov [#allocation11]  }
  0x3d   :  { %s86_s18 = sshll.u32 %s2344_s17, 4  ;;  %s87_s18 = int_to_ptr.vmem [resolvable:$true] %s86_s18 }
  0x3e   :  { %s2291_s19 = scalar_lea.vmem %s87_s18, 1024  ;;  %p2296_p12 = scmp.lt.s32.totalorder %s87_s18, %s87_s18 }
  0x3f   :  { %p2292_p11 = scmp.ne.s32.totalorder %s87_s18, %s2291_s19  ;;  %p2297_p13 = scmp.lt.s32.totalorder %s2291_s19, %s2291_s19 }
  0x41   :  { %p2298_p0 = por %p2297_p13, %p2296_p12 }
  0x43   :  { %p2299_p1 = pnand %p2298_p0, %p2292_p11 }
  0x45   :  { %2302 = shalt.err (!%p2299_p1)
}
  0x46   :  { %92 = dma.hbm_to_vmem [thread:$0]  %s2498_s7, 1024, %s87_s18, [#allocation12], %s2342_s0, %s2342_s0, %s2343_s14  }
  0x47   :  { %2323 = dma.done.wait [#allocation3], 256  }
  0x48   :  { %2324 = vsyncadd [#allocation3], 4294967040 }
  0x49   :  { %2325 = dma.done.wait [#allocation6], 2176  }
  0x4a   :  { %2326 = vsyncadd [#allocation6], 4294965120 }
  0x4b   :  { %2327 = dma.done.wait [#allocation9], 18432  }
  0x4c   :  { %2328 = vsyncadd [#allocation9], 4294948864 }
  0x4d   :  { %2329 = dma.done.wait [#allocation12], 1024  }
  0x4e   :  { %2330 = vsyncadd [#allocation12], 4294966272  ;;  %v2345_v0 = vmov 0   ;;  %v125_v1 = vld [vmem:[#allocation5 + $0x40] sm:$0xff]  ;;  %v126_v3 = vld [vmem:[#allocation5 + $0x48] sm:$0xff]  ;;  %vm255_vm0 = vcmask 261120  }
  0x4f   :  { %291 = vmatprep.mubr.bf16.mxu0 %v2345_v0  ;;  %334 = vmatprep.mubr.bf16.mxu1 %v2345_v0  ;;  %v129_v2 = vld [vmem:[#allocation5 + $0x60] sm:$0xff]  ;;  %v130_v5 = vld [vmem:[#allocation5 + $0x68] sm:$0xff]  ;;  %v114_v15 = vld [vmem:[#allocation2] sm:$0xff]  ;;  %vm2347_vm1 = vmmov 0  }
  0x50   :  { %v1735_v4 = vcombine.high %v125_v1, %v129_v2  ;;  %v1734_v6 = vcombine.low %v125_v1, %v129_v2  ;;  %v117_v7 = vld [vmem:[#allocation5] sm:$0xff]  ;;  %v1737_v9 = vcombine.high %v126_v3, %v130_v5  ;;  %v1736_v10 = vcombine.low %v126_v3, %v130_v5  ;;  %v118_v12 = vld [vmem:[#allocation5 + $0x8] sm:$0xff]  ;;  %v127_v16 = vld [vmem:[#allocation5 + $0x50] sm:$0xff] }
  0x51   :  { %v121_v8 = vld [vmem:[#allocation5 + $0x20] sm:$0xff]  ;;  %v122_v13 = vld [vmem:[#allocation5 + $0x28] sm:$0xff]  ;;  %v131_v17 = vld [vmem:[#allocation5 + $0x70] sm:$0xff] }
  0x52   :  { %v1727_v11 = vcombine.high %v117_v7, %v121_v8  ;;  %271 = vmatprep.subr.bf16.mxu0 %v1735_v4  ;;  %v1729_v14 = vcombine.high %v118_v12, %v122_v13  ;;  %314 = vmatprep.subr.bf16.mxu1 %v1737_v9  ;;  %v1726_v18 = vcombine.low %v117_v7, %v121_v8  ;;  %v115_v19 = vld [vmem:[#allocation2 + $0x8] sm:$0xff]  ;;  %v119_v24 = vld [vmem:[#allocation5 + $0x10] sm:$0xff] }
  0x53   :  { %272 = vmatpush1.bf16.msra.mxu0 %v1734_v6  ;;  %v128_v20 = vld [vmem:[#allocation5 + $0x58] sm:$0xff]  ;;  %315 = vmatpush1.bf16.msra.mxu1 %v1736_v10  ;;  %v1728_v22 = vcombine.low %v118_v12, %v122_v13  ;;  %v1739_v23 = vcombine.high %v127_v16, %v131_v17  ;;  %v123_v25 = vld [vmem:[#allocation5 + $0x30] sm:$0xff]  ;;  %v116_v28 = vpack.c.bf16 %v115_v19, %v114_v15 }
  0x54   :  { %v132_v21 = vld [vmem:[#allocation5 + $0x78] sm:$0xff]  ;;  %273 = vmatprep.subr.bf16.mxu0 %v1727_v11  ;;  %316 = vmatprep.subr.bf16.mxu1 %v1729_v14  ;;  %v1738_v30 = vcombine.low %v127_v16, %v131_v17  ;;  %v1731_v32 = vcombine.high %v119_v24, %v123_v25  ;;  %v1730_v34 = vcombine.low %v119_v24, %v123_v25  ;;  %v1975_v40 = vld [vmem:[#allocation8 + $0x64] ss:$8 sps:$4 sm:$0xff]   ;;  %v1973_v42 = vld [vmem:[#allocation8 + $0x60] ss:$8 sps:$4 sm:$0xff]  }
  0x55   :  { %v1741_v26 = vcombine.high %v128_v20, %v132_v21  ;;  %v120_v27 = vld [vmem:[#allocation5 + $0x18] sm:$0xff]  ;;  %v1740_v31 = vcombine.low %v128_v20, %v132_v21  ;;  %v1978_v41 = vld [vmem:[#allocation8 + $0x164] ss:$8 sps:$4 sm:$0xff]   ;;  %v1976_v43 = vld [vmem:[#allocation8 + $0x160] ss:$8 sps:$4 sm:$0xff]  }
  0x56   :  { %v124_v29 = vld [vmem:[#allocation5 + $0x38] sm:$0xff]  ;;  %v1987_v48 = vld [vmem:[#allocation8 + $0x44] ss:$8 sps:$4 sm:$0xff]   ;;  %v1985_v50 = vld [vmem:[#allocation8 + $0x40] ss:$8 sps:$4 sm:$0xff]  }
  0x57   :  { %274 = vmatpush1.bf16.msra.mxu0 %v1726_v18  ;;  %317 = vmatpush1.bf16.msra.mxu1 %v1728_v22  ;;  %v1733_v33 = vcombine.high %v120_v27, %v124_v29  ;;  %v1732_v35 = vcombine.low %v120_v27, %v124_v29  ;;  %v1969_v36 = vld [vmem:[#allocation8 + $0x74] ss:$8 sps:$4 sm:$0xff]   ;;  %v1967_v38 = vld [vmem:[#allocation8 + $0x70] ss:$8 sps:$4 sm:$0xff]   ;;  %v1990_v49 = vld [vmem:[#allocation8 + $0x144] ss:$8 sps:$4 sm:$0xff]  }
  0x58   :  { %357 = vmatprep.subr.bf16.mxu0 %v1739_v23  ;;  %400 = vmatprep.subr.bf16.mxu1 %v1741_v26  ;;  %v1972_v37 = vld [vmem:[#allocation8 + $0x174] ss:$8 sps:$4 sm:$0xff]   ;;  %v1970_v39 = vld [vmem:[#allocation8 + $0x170] ss:$8 sps:$4 sm:$0xff]   ;;  %v1988_v51 = vld [vmem:[#allocation8 + $0x140] ss:$8 sps:$4 sm:$0xff]  }
  0x59   :  { %v1981_v44 = vld [vmem:[#allocation8 + $0x54] ss:$8 sps:$4 sm:$0xff]   ;;  %v1979_v46 = vld [vmem:[#allocation8 + $0x50] ss:$8 sps:$4 sm:$0xff]   ;;  %v1999_v56 = vld [vmem:[#allocation8 + $0x24] ss:$8 sps:$4 sm:$0xff]  }
  0x5a   :  { %1742 = vmatmul.mubr.msk.bf16.vlgmr.msra.gmra.mxu0 %vm255_vm0, %v116_v28  ;;  %1743 = vmatmul.mubr.msk.bf16.vlgmr.msra.gmra.mxu1 %vm255_vm0, %v116_v28  ;;  %v1984_v45 = vld [vmem:[#allocation8 + $0x154] ss:$8 sps:$4 sm:$0xff]   ;;  %v1982_v47 = vld [vmem:[#allocation8 + $0x150] ss:$8 sps:$4 sm:$0xff]   ;;  %v2002_v57 = vld [vmem:[#allocation8 + $0x124] ss:$8 sps:$4 sm:$0xff]  }
  0x5b   :  { %358 = vmatpush1.bf16.msra.mxu0 %v1738_v30  ;;  %401 = vmatpush1.bf16.msra.mxu1 %v1740_v31  ;;  %v1993_v52 = vld [vmem:[#allocation8 + $0x34] ss:$8 sps:$4 sm:$0xff]   ;;  %v1991_v54 = vld [vmem:[#allocation8 + $0x30] ss:$8 sps:$4 sm:$0xff]   ;;  %v1997_v58 = vld [vmem:[#allocation8 + $0x20] ss:$8 sps:$4 sm:$0xff]  }
  0x5c   :  { %359 = vmatprep.subr.bf16.mxu0 %v1731_v32  ;;  %402 = vmatprep.subr.bf16.mxu1 %v1733_v33  ;;  %v1996_v53 = vld [vmem:[#allocation8 + $0x134] ss:$8 sps:$4 sm:$0xff]   ;;  %v1994_v55 = vld [vmem:[#allocation8 + $0x130] ss:$8 sps:$4 sm:$0xff]   ;;  %v2000_v59 = vld [vmem:[#allocation8 + $0x120] ss:$8 sps:$4 sm:$0xff]  }
  0x5d   :  { %377 = vmatprep.mubr.bf16.mxu0 %v2345_v0  ;;  %420 = vmatprep.mubr.bf16.mxu1 %v2345_v0  ;;  %v2005_v60 = vld [vmem:[#allocation8 + $0x14] ss:$8 sps:$4 sm:$0xff]   ;;  %v2003_v62 = vld [vmem:[#allocation8 + $0x10] ss:$8 sps:$4 sm:$0xff]   ;;  %v2011_v0 = vld [vmem:[#allocation8 + $0x4] ss:$8 sps:$4 sm:$0xff]  }
  0x5e   :  { %v2008_v61 = vld [vmem:[#allocation8 + $0x114] ss:$8 sps:$4 sm:$0xff]   ;;  %v2006_v63 = vld [vmem:[#allocation8 + $0x110] ss:$8 sps:$4 sm:$0xff]   ;;  %v2014_v1 = vld [vmem:[#allocation8 + $0x104] ss:$8 sps:$4 sm:$0xff]  }
  0x5f   :  { %360 = vmatpush1.bf16.msra.mxu0 %v1730_v34  ;;  %403 = vmatpush1.bf16.msra.mxu1 %v1732_v35  ;;  %v2009_v2 = vld [vmem:[#allocation8] ss:$8 sps:$4 sm:$0xff]   ;;  %v2017_v4 = vld [vmem:[#allocation8 + $0xf4] ss:$8 sps:$4 sm:$0xff]   ;;  %v2015_v6 = vld [vmem:[#allocation8 + $0xf0] ss:$8 sps:$4 sm:$0xff]  }
  0x60   :  { %1235 = vmatprep.subr.bf16.mxu0 %v1969_v36  ;;  %1278 = vmatprep.subr.bf16.mxu1 %v1972_v37  ;;  %v2012_v3 = vld [vmem:[#allocation8 + $0x100] ss:$8 sps:$4 sm:$0xff]   ;;  %v2020_v5 = vld [vmem:[#allocation8 + $0x1f4] ss:$8 sps:$4 sm:$0xff]   ;;  %v2018_v7 = vld [vmem:[#allocation8 + $0x1f0] ss:$8 sps:$4 sm:$0xff]  }
  0x61   :  { %v2023_v8 = vld [vmem:[#allocation8 + $0xe4] ss:$8 sps:$4 sm:$0xff]   ;;  %v2021_v10 = vld [vmem:[#allocation8 + $0xe0] ss:$8 sps:$4 sm:$0xff]   ;;  %v2029_v12 = vld [vmem:[#allocation8 + $0xd4] ss:$8 sps:$4 sm:$0xff]  }
  0x62   :  { %1744 = vmatmul.mubr.msk.bf16.vlgmr.msra.gmra.mxu0 %vm255_vm0, %v116_v28  ;;  %1745 = vmatmul.mubr.msk.bf16.vlgmr.msra.gmra.mxu1 %vm255_vm0, %v116_v28  ;;  %v2026_v9 = vld [vmem:[#allocation8 + $0x1e4] ss:$8 sps:$4 sm:$0xff]   ;;  %v2024_v11 = vld [vmem:[#allocation8 + $0x1e0] ss:$8 sps:$4 sm:$0xff]   ;;  %v2032_v13 = vld [vmem:[#allocation8 + $0x1d4] ss:$8 sps:$4 sm:$0xff]  }
  0x63   :  { %1236 = vmatpush1.bf16.msra.mxu0 %v1967_v38  ;;  %1279 = vmatpush1.bf16.msra.mxu1 %v1970_v39  ;;  %v2027_v14 = vld [vmem:[#allocation8 + $0xd0] ss:$8 sps:$4 sm:$0xff]   ;;  %v2035_v16 = vld [vmem:[#allocation8 + $0xc4] ss:$8 sps:$4 sm:$0xff]   ;;  %v2033_v18 = vld [vmem:[#allocation8 + $0xc0] ss:$8 sps:$4 sm:$0xff]   ;;  %v135_v38 = vlaneseq }
  0x64   :  { %1237 = vmatprep.subr.bf16.mxu0 %v1975_v40  ;;  %1280 = vmatprep.subr.bf16.mxu1 %v1978_v41  ;;  %v2030_v15 = vld [vmem:[#allocation8 + $0x1d0] ss:$8 sps:$4 sm:$0xff]   ;;  %v2038_v17 = vld [vmem:[#allocation8 + $0x1c4] ss:$8 sps:$4 sm:$0xff]   ;;  %v2036_v19 = vld [vmem:[#allocation8 + $0x1c0] ss:$8 sps:$4 sm:$0xff]  }
  0x65   :  { %v2041_v20 = vld [vmem:[#allocation8 + $0xb4] ss:$8 sps:$4 sm:$0xff]   ;;  %v2039_v22 = vld [vmem:[#allocation8 + $0xb0] ss:$8 sps:$4 sm:$0xff]   ;;  %v2047_v24 = vld [vmem:[#allocation8 + $0xa4] ss:$8 sps:$4 sm:$0xff]  }
  0x66   :  { %v2044_v21 = vld [vmem:[#allocation8 + $0x1b4] ss:$8 sps:$4 sm:$0xff]   ;;  %v2042_v23 = vld [vmem:[#allocation8 + $0x1b0] ss:$8 sps:$4 sm:$0xff]   ;;  %v2050_v25 = vld [vmem:[#allocation8 + $0x1a4] ss:$8 sps:$4 sm:$0xff]  }
  0x67   :  { %1238 = vmatpush1.bf16.msra.mxu0 %v1973_v42  ;;  %1281 = vmatpush1.bf16.msra.mxu1 %v1976_v43  ;;  %v2045_v26 = vld [vmem:[#allocation8 + $0xa0] ss:$8 sps:$4 sm:$0xff]   ;;  %v2053_v28 = vld [vmem:[#allocation8 + $0x94] ss:$8 sps:$4 sm:$0xff]   ;;  %v2051_v30 = vld [vmem:[#allocation8 + $0x90] ss:$8 sps:$4 sm:$0xff]  }
  0x68   :  { %1239 = vmatprep.subr.bf16.mxu0 %v1981_v44  ;;  %1282 = vmatprep.subr.bf16.mxu1 %v1984_v45  ;;  %v2048_v27 = vld [vmem:[#allocation8 + $0x1a0] ss:$8 sps:$4 sm:$0xff]   ;;  %v2056_v29 = vld [vmem:[#allocation8 + $0x194] ss:$8 sps:$4 sm:$0xff]   ;;  %v2054_v31 = vld [vmem:[#allocation8 + $0x190] ss:$8 sps:$4 sm:$0xff]  }
  0x69   :  { %v2059_v32 = vld [vmem:[#allocation8 + $0x84] ss:$8 sps:$4 sm:$0xff]   ;;  %v2057_v34 = vld [vmem:[#allocation8 + $0x80] ss:$8 sps:$4 sm:$0xff]   ;;  %v2065_v36 = vld [vmem:[#allocation8 + $0x274] ss:$8 sps:$4 sm:$0xff]  }
  0x6a   :  { %v2062_v33 = vld [vmem:[#allocation8 + $0x184] ss:$8 sps:$4 sm:$0xff]   ;;  %v2060_v35 = vld [vmem:[#allocation8 + $0x180] ss:$8 sps:$4 sm:$0xff]   ;;  %v2068_v37 = vld [vmem:[#allocation8 + $0x374] ss:$8 sps:$4 sm:$0xff]  }
  0x6b   :  { %1240 = vmatpush1.bf16.msra.mxu0 %v1979_v46  ;;  %1283 = vmatpush1.bf16.msra.mxu1 %v1982_v47  ;;  %v2427_v39 = vshrl.u32 %v135_v38, 7  ;;  %v2432_v43 = vld [vmem:[#allocation7] sm:$0xff] }
  0x6c   :  { %1241 = vmatprep.subr.bf16.mxu0 %v1987_v48  ;;  %1284 = vmatprep.subr.bf16.mxu1 %v1990_v49  ;;  %v2080_v38 = vld [vmem:[#allocation8 + $0x354] ss:$8 sps:$4 sm:$0xff]  }
  0x6d   :  { %v141_v40 = vsub.s32 1, %v2427_v39  ;;  %v137_v41 = vsub.s32 0, %v2427_v39  ;;  %v149_v42 = vsub.s32 3, %v2427_v39  ;;  %v145_v44 = vsub.s32 2, %v2427_v39 }
  0x6f   :  { %1242 = vmatpush1.bf16.msra.mxu0 %v1985_v50  ;;  %1285 = vmatpush1.bf16.msra.mxu1 %v1988_v51  ;;  %v142_v47 = vrot.slane %v2432_v43, %v141_v40  ;;  %v138_v48 = vrot.slane %v2432_v43, %v137_v41  ;;  %v150_v50 = vrot.slane %v2432_v43, %v149_v42 }
  0x70   :  { %1243 = vmatprep.subr.bf16.mxu0 %v1993_v52  ;;  %1286 = vmatprep.subr.bf16.mxu1 %v1996_v53  ;;  %v146_v51 = vrot.slane %v2432_v43, %v145_v44  ;;  %v157_v53 = vsub.s32 5, %v2427_v39 }
  0x73   :  { %1244 = vmatpush1.bf16.msra.mxu0 %v1991_v54  ;;  %1287 = vmatpush1.bf16.msra.mxu1 %v1994_v55  ;;  %v165_v55 = vsub.s32 7, %v2427_v39 }
  0x74   :  { %1245 = vmatprep.subr.bf16.mxu0 %v1999_v56  ;;  %1288 = vmatprep.subr.bf16.mxu1 %v2002_v57 }
  0x77   :  { %1246 = vmatpush1.bf16.msra.mxu0 %v1997_v58  ;;  %1289 = vmatpush1.bf16.msra.mxu1 %v2000_v59 }
  0x78   :  { %1247 = vmatprep.subr.bf16.mxu0 %v2005_v60  ;;  %1290 = vmatprep.subr.bf16.mxu1 %v2008_v61 }
  0x7b   :  { %1248 = vmatpush1.bf16.msra.mxu0 %v2003_v62  ;;  %1291 = vmatpush1.bf16.msra.mxu1 %v2006_v63 }
  0x7c   :  { %1249 = vmatprep.subr.bf16.mxu0 %v2011_v0  ;;  %1292 = vmatprep.subr.bf16.mxu1 %v2014_v1 }
  0x7f   :  { %1250 = vmatpush1.bf16.msra.mxu0 %v2009_v2  ;;  %1293 = vmatpush1.bf16.msra.mxu1 %v2012_v3  ;;  %v158_v2 = vrot.slane %v2432_v43, %v157_v53  ;;  %v2089_v53 = vld [vmem:[#allocation8 + $0x234] ss:$8 sps:$4 sm:$0xff]  }
  0x80   :  { %1251 = vmatprep.subr.bf16.mxu0 %v2017_v4  ;;  %1294 = vmatprep.subr.bf16.mxu1 %v2020_v5 }
  0x83   :  { %1252 = vmatpush2.bf16.msra.mxu0 %v2015_v6  ;;  %1295 = vmatpush2.bf16.msra.mxu1 %v2018_v7  ;;  %v166_v6 = vrot.slane %v2432_v43, %v165_v55  ;;  %v2087_v55 = vld [vmem:[#allocation8 + $0x230] ss:$8 sps:$4 sm:$0xff]  }
  0x84   :  { %1253 = vmatprep.subr.bf16.mxu0 %v2023_v8  ;;  %1296 = vmatprep.subr.bf16.mxu1 %v2026_v9 }
  0x87   :  { %1254 = vmatpush2.bf16.msra.mxu0 %v2021_v10  ;;  %1297 = vmatpush2.bf16.msra.mxu1 %v2024_v11 }
  0x88   :  { %1255 = vmatprep.subr.bf16.mxu0 %v2029_v12  ;;  %1298 = vmatprep.subr.bf16.mxu1 %v2032_v13 }
  0x8b   :  { %1256 = vmatpush2.bf16.msra.mxu0 %v2027_v14  ;;  %1299 = vmatpush2.bf16.msra.mxu1 %v2030_v15 }
  0x8c   :  { %1257 = vmatprep.subr.bf16.mxu0 %v2035_v16  ;;  %1300 = vmatprep.subr.bf16.mxu1 %v2038_v17  ;;  %v2063_v17 = vld [vmem:[#allocation8 + $0x270] ss:$8 sps:$4 sm:$0xff]  }
  0x8f   :  { %1258 = vmatpush2.bf16.msra.mxu0 %v2033_v18  ;;  %1301 = vmatpush2.bf16.msra.mxu1 %v2036_v19 }
  0x90   :  { %1259 = vmatprep.subr.bf16.mxu0 %v2041_v20  ;;  %1302 = vmatprep.subr.bf16.mxu1 %v2044_v21 }
  0x93   :  { %1260 = vmatpush2.bf16.msra.mxu0 %v2039_v22  ;;  %1303 = vmatpush2.bf16.msra.mxu1 %v2042_v23  ;;  %v2066_v22 = vld [vmem:[#allocation8 + $0x370] ss:$8 sps:$4 sm:$0xff]   ;;  %v2071_v23 = vld [vmem:[#allocation8 + $0x264] ss:$8 sps:$4 sm:$0xff]  }
  0x94   :  { %1261 = vmatprep.subr.bf16.mxu0 %v2047_v24  ;;  %1304 = vmatprep.subr.bf16.mxu1 %v2050_v25 }
  0x97   :  { %1262 = vmatpush2.bf16.msra.mxu0 %v2045_v26  ;;  %1305 = vmatpush2.bf16.msra.mxu1 %v2048_v27  ;;  %v2074_v27 = vld [vmem:[#allocation8 + $0x364] ss:$8 sps:$4 sm:$0xff]  }
  0x98   :  { %1263 = vmatprep.subr.bf16.mxu0 %v2053_v28  ;;  %1306 = vmatprep.subr.bf16.mxu1 %v2056_v29 }
  0x9b   :  { %1264 = vmatpush2.bf16.msra.mxu0 %v2051_v30  ;;  %1307 = vmatpush2.bf16.msra.mxu1 %v2054_v31  ;;  %v2069_v30 = vld [vmem:[#allocation8 + $0x260] ss:$8 sps:$4 sm:$0xff]  }
  0x9c   :  { %1265 = vmatprep.subr.bf16.mxu0 %v2059_v32  ;;  %1308 = vmatprep.subr.bf16.mxu1 %v2062_v33 }
  0x9f   :  { %1266 = vmatpush2.bf16.msra.mxu0 %v2057_v34  ;;  %1309 = vmatpush2.bf16.msra.mxu1 %v2060_v35  ;;  %v2072_v34 = vld [vmem:[#allocation8 + $0x360] ss:$8 sps:$4 sm:$0xff]   ;;  %v2077_v35 = vld [vmem:[#allocation8 + $0x254] ss:$8 sps:$4 sm:$0xff]  }
  0xa0   :  { %1321 = vmatprep.subr.bf16.mxu0 %v2065_v36  ;;  %1364 = vmatprep.subr.bf16.mxu1 %v2068_v37 }
 0x11a   :  { %v293_v45 = vpop.f32.mrf.mxu0  ;;  %v336_v46 = vpop.f32.mrf.mxu1 }
 0x11b   :  { %v294_v59 = vadd.f32 %v293_v45, %v138_v48  ;;  %v337_v63 = vadd.f32 %v336_v46, %v146_v51  ;;  %v2075_v45 = vld [vmem:[#allocation8 + $0x250] ss:$8 sps:$4 sm:$0xff]  }
 0x11c   :  { %v295_v49 = vpop.f32.mrf.mxu0  ;;  %v338_v52 = vpop.f32.mrf.mxu1 }
 0x11d   :  { %v296_v56 = vadd.f32 %v295_v49, %v142_v47  ;;  %v339_v60 = vadd.f32 %v338_v52, %v150_v50  ;;  %v431_v11 = vmax.f32 %v294_v59, 0.0  ;;  %v433_v15 = vmax.f32 %v337_v63, 0.0  ;;  %v2084_v52 = vld [vmem:[#allocation8 + $0x340] ss:$8 sps:$4 sm:$0xff]   ;;  %v2099_v63 = vld [vmem:[#allocation8 + $0x210] ss:$8 sps:$4 sm:$0xff]  }
 0x11e   :  { %v297_v54 = vpop.f32.mrf.mxu0  ;;  %v340_v58 = vpop.f32.mrf.mxu1  ;;  %v2093_v59 = vld [vmem:[#allocation8 + $0x220] ss:$8 sps:$4 sm:$0xff]  }
 0x11f   :  { %v298_v57 = vadd.f32 %v297_v54, %v138_v48  ;;  %v341_v61 = vadd.f32 %v340_v58, %v146_v51  ;;  %v432_v7 = vmax.f32 %v296_v56, 0.0  ;;  %v434_v12 = vmax.f32 %v339_v60, 0.0  ;;  %v2083_v48 = vld [vmem:[#allocation8 + $0x244] ss:$8 sps:$4 sm:$0xff]   ;;  %v2081_v51 = vld [vmem:[#allocation8 + $0x240] ss:$8 sps:$4 sm:$0xff]  }
 0x120   :  { %v299_v62 = vpop.f32.mrf.mxu0  ;;  %v342_v1 = vpop.f32.mrf.mxu1  ;;  %v2092_v54 = vld [vmem:[#allocation8 + $0x334] ss:$8 sps:$4 sm:$0xff]   ;;  %v2090_v56 = vld [vmem:[#allocation8 + $0x330] ss:$8 sps:$4 sm:$0xff]   ;;  %v2098_v58 = vld [vmem:[#allocation8 + $0x324] ss:$8 sps:$4 sm:$0xff]  }
 0x121   :  { %v300_v0 = vadd.f32 %v299_v62, %v142_v47  ;;  %v439_v3 = vmax.f32 %v298_v57, 0.0  ;;  %v343_v4 = vadd.f32 %v342_v1, %v150_v50  ;;  %v441_v8 = vmax.f32 %v341_v61, 0.0  ;;  %v2078_v47 = vld [vmem:[#allocation8 + $0x350] ss:$8 sps:$4 sm:$0xff]   ;;  %v2086_v50 = vld [vmem:[#allocation8 + $0x344] ss:$8 sps:$4 sm:$0xff]  }
 0x122   :  { %v2446_v5 = vpop.f32.mrf.mxu0  ;;  %v2449_v10 = vpop.f32.mrf.mxu1  ;;  %v2095_v57 = vld [vmem:[#allocation8 + $0x224] ss:$8 sps:$4 sm:$0xff]   ;;  %v2096_v60 = vld [vmem:[#allocation8 + $0x320] ss:$8 sps:$4 sm:$0xff]   ;;  %v2101_v61 = vld [vmem:[#allocation8 + $0x214] ss:$8 sps:$4 sm:$0xff]  }
 0x123   :  { %v440_v9 = vmax.f32 %v300_v0, 0.0  ;;  %v442_v13 = vmax.f32 %v343_v4, 0.0  ;;  %v447_v20 = vpack.c.bf16 %v439_v3, %v431_v11  ;;  %v449_v26 = vpack.c.bf16 %v441_v8, %v433_v15  ;;  %v2104_v62 = vld [vmem:[#allocation8 + $0x314] ss:$8 sps:$4 sm:$0xff]   ;;  %v2102_v0 = vld [vmem:[#allocation8 + $0x310] ss:$8 sps:$4 sm:$0xff]  }
 0x124   :  { %v381_v14 = vpop.f32.mrf.mxu0  ;;  %v424_v19 = vpop.f32.mrf.mxu1  ;;  %v2107_v1 = vld [vmem:[#allocation8 + $0x204] ss:$8 sps:$4 sm:$0xff]   ;;  %v2105_v3 = vld [vmem:[#allocation8 + $0x200] ss:$8 sps:$4 sm:$0xff]   ;;  %v2111_v8 = vld [vmem:[#allocation8 + $0x2f0] ss:$8 sps:$4 sm:$0xff]  }
 0x125   :  { %v448_v16 = vpack.c.bf16 %v440_v9, %v432_v7  ;;  %v382_v18 = vadd.f32 %v381_v14, %v158_v2  ;;  %v450_v21 = vpack.c.bf16 %v442_v13, %v434_v12  ;;  %v425_v25 = vadd.f32 %v424_v19, %v166_v6  ;;  %v2108_v4 = vld [vmem:[#allocation8 + $0x300] ss:$8 sps:$4 sm:$0xff]   ;;  %v2116_v7 = vld [vmem:[#allocation8 + $0x3f4] ss:$8 sps:$4 sm:$0xff]   ;;  %v2114_v9 = vld [vmem:[#allocation8 + $0x3f0] ss:$8 sps:$4 sm:$0xff]  }
 0x126   :  { %v2451_v24 = vpop.f32.mrf.mxu0  ;;  %v2453_v28 = vpop.f32.mrf.mxu1  ;;  %v2119_v11 = vld [vmem:[#allocation8 + $0x2e4] ss:$8 sps:$4 sm:$0xff]   ;;  %v2117_v13 = vld [vmem:[#allocation8 + $0x2e0] ss:$8 sps:$4 sm:$0xff]   ;;  %v2125_v15 = vld [vmem:[#allocation8 + $0x2d4] ss:$8 sps:$4 sm:$0xff]  }
 0x127   :  { %1267 = vmatprep.mubr.bf16.mxu0 %v448_v16  ;;  %1310 = vmatprep.mubr.bf16.mxu1 %v450_v21  ;;  %v436_v31 = vmax.f32 %v382_v18, 0.0  ;;  %v438_v36 = vmax.f32 %v425_v25, 0.0  ;;  %v2122_v12 = vld [vmem:[#allocation8 + $0x3e4] ss:$8 sps:$4 sm:$0xff]   ;;  %v2120_v14 = vld [vmem:[#allocation8 + $0x3e0] ss:$8 sps:$4 sm:$0xff]  }
 0x128   :  { %1268 = vmatmul.mubr.bf16.vlgmr.msra.gmra.mxu0 %v447_v20  ;;  %v385_v29 = vpop.f32.mrf.mxu0  ;;  %1311 = vmatmul.mubr.bf16.vlgmr.msra.gmra.mxu1 %v449_v26  ;;  %v428_v33 = vpop.f32.mrf.mxu1  ;;  %v2128_v16 = vld [vmem:[#allocation8 + $0x3d4] ss:$8 sps:$4 sm:$0xff]   ;;  %v2126_v18 = vld [vmem:[#allocation8 + $0x3d0] ss:$8 sps:$4 sm:$0xff]   ;;  %v2131_v19 = vld [vmem:[#allocation8 + $0x2c4] ss:$8 sps:$4 sm:$0xff]  }
 0x129   :  { %1322 = vmatpush1.bf16.msra.mxu0 %v2063_v17  ;;  %v386_v32 = vadd.f32 %v385_v29, %v158_v2  ;;  %1365 = vmatpush1.bf16.msra.mxu1 %v2066_v22  ;;  %v429_v37 = vadd.f32 %v428_v33, %v166_v6  ;;  %v2110_v2 = vld [vmem:[#allocation8 + $0x304] ss:$8 sps:$4 sm:$0xff]   ;;  %v2113_v6 = vld [vmem:[#allocation8 + $0x2f4] ss:$8 sps:$4 sm:$0xff]   ;;  %v2123_v17 = vld [vmem:[#allocation8 + $0x2d0] ss:$8 sps:$4 sm:$0xff]  }
 0x12a   :  { %1323 = vmatprep.subr.bf16.mxu0 %v2071_v23  ;;  %1366 = vmatprep.subr.bf16.mxu1 %v2074_v27  ;;  %v2134_v20 = vld [vmem:[#allocation8 + $0x3c4] ss:$8 sps:$4 sm:$0xff]   ;;  %v2129_v21 = vld [vmem:[#allocation8 + $0x2c0] ss:$8 sps:$4 sm:$0xff]   ;;  %v2137_v23 = vld [vmem:[#allocation8 + $0x2b4] ss:$8 sps:$4 sm:$0xff]  }
 0x12b   :  { %v444_v42 = vmax.f32 %v386_v32, 0.0  ;;  %v446_v44 = vmax.f32 %v429_v37, 0.0  ;;  %v2132_v22 = vld [vmem:[#allocation8 + $0x3c0] ss:$8 sps:$4 sm:$0xff]   ;;  %v2140_v25 = vld [vmem:[#allocation8 + $0x3b4] ss:$8 sps:$4 sm:$0xff]  }
 0x12c   :  { %v2135_v26 = vld [vmem:[#allocation8 + $0x2b0] ss:$8 sps:$4 sm:$0xff]   ;;  %v153_v27 = vsub.s32 4, %v2427_v39  ;;  %v2146_v32 = vld [vmem:[#allocation8 + $0x3a4] ss:$8 sps:$4 sm:$0xff]  }
 0x12d   :  { %1324 = vmatpush1.bf16.msra.mxu0 %v2069_v30  ;;  %v452_v46 = vpack.c.bf16 %v444_v42, %v436_v31  ;;  %1367 = vmatpush1.bf16.msra.mxu1 %v2072_v34  ;;  %v454_v49 = vpack.c.bf16 %v446_v44, %v438_v36  ;;  %v2138_v29 = vld [vmem:[#allocation8 + $0x3b0] ss:$8 sps:$4 sm:$0xff]   ;;  %v2143_v30 = vld [vmem:[#allocation8 + $0x2a4] ss:$8 sps:$4 sm:$0xff]   ;;  %v161_v31 = vsub.s32 6, %v2427_v39 }
 0x12e   :  { %1325 = vmatprep.subr.bf16.mxu0 %v2077_v35  ;;  %1368 = vmatprep.subr.bf16.mxu1 %v2080_v38  ;;  %v2141_v33 = vld [vmem:[#allocation8 + $0x2a0] ss:$8 sps:$4 sm:$0xff]   ;;  %v154_v34 = vrot.slane %v2432_v43, %v153_v27  ;;  %v2149_v36 = vld [vmem:[#allocation8 + $0x294] ss:$8 sps:$4 sm:$0xff]   ;;  %v2147_v42 = vld [vmem:[#allocation8 + $0x290] ss:$8 sps:$4 sm:$0xff]  }
 0x12f   :  { %1353 = vmatprep.mubr.bf16.mxu0 %v452_v46  ;;  %1396 = vmatprep.mubr.bf16.mxu1 %v454_v49  ;;  %v2144_v35 = vld [vmem:[#allocation8 + $0x3a0] ss:$8 sps:$4 sm:$0xff]   ;;  %v162_v37 = vrot.slane %v2432_v43, %v161_v31  ;;  %v2152_v38 = vld [vmem:[#allocation8 + $0x394] ss:$8 sps:$4 sm:$0xff]   ;;  %v2150_v46 = vld [vmem:[#allocation8 + $0x390] ss:$8 sps:$4 sm:$0xff]  }
 0x130   :  { %v380_v44 = vadd.f32 %v2446_v5, %v154_v34  ;;  %v2153_v43 = vld [vmem:[#allocation8 + $0x280] ss:$8 sps:$4 sm:$0xff]  }
 0x131   :  { %1326 = vmatpush1.bf16.msra.mxu0 %v2075_v45  ;;  %1369 = vmatpush1.bf16.msra.mxu1 %v2078_v47  ;;  %v384_v45 = vadd.f32 %v2451_v24, %v154_v34  ;;  %v2155_v47 = vld [vmem:[#allocation8 + $0x284] ss:$8 sps:$4 sm:$0xff]   ;;  %v427_v49 = vadd.f32 %v2453_v28, %v162_v37  ;;  %v2160_v28 = vld [vmem:[#allocation10 + $0x38] sm:$0xff]  }
 0x132   :  { %1327 = vmatprep.subr.bf16.mxu0 %v2083_v48  ;;  %1370 = vmatprep.subr.bf16.mxu1 %v2086_v50  ;;  %v423_v48 = vadd.f32 %v2449_v10, %v162_v37  ;;  %v2158_v50 = vld [vmem:[#allocation8 + $0x384] ss:$8 sps:$4 sm:$0xff]   ;;  %v2159_v10 = vld [vmem:[#allocation10 + $0x78] sm:$0xff]  }
 0x134   :  { %v437_v5 = vmax.f32 %v423_v48, 0.0 }
 0x135   :  { %1328 = vmatpush1.bf16.msra.mxu0 %v2081_v51  ;;  %1371 = vmatpush1.bf16.msra.mxu1 %v2084_v52  ;;  %v435_v51 = vmax.f32 %v380_v44, 0.0  ;;  %v443_v52 = vmax.f32 %v384_v45, 0.0 }
 0x136   :  { %1329 = vmatprep.subr.bf16.mxu0 %v2089_v53  ;;  %1372 = vmatprep.subr.bf16.mxu1 %v2092_v54  ;;  %v2156_v53 = vld [vmem:[#allocation8 + $0x380] ss:$8 sps:$4 sm:$0xff]   ;;  %v445_v54 = vmax.f32 %v427_v49, 0.0 }
 0x137   :  { %v451_v24 = vpack.c.bf16 %v443_v52, %v435_v51 }
 0x139   :  { %1330 = vmatpush1.bf16.msra.mxu0 %v2087_v55  ;;  %1373 = vmatpush1.bf16.msra.mxu1 %v2090_v56  ;;  %v453_v55 = vpack.c.bf16 %v445_v54, %v437_v5  ;;  %v2161_v56 = vld [vmem:[#allocation10 + $0x70] sm:$0xff]  }
 0x13a   :  { %1331 = vmatprep.subr.bf16.mxu0 %v2095_v57  ;;  %1374 = vmatprep.subr.bf16.mxu1 %v2098_v58  ;;  %v2162_v57 = vld [vmem:[#allocation10 + $0x30] sm:$0xff]   ;;  %v2163_v58 = vld [vmem:[#allocation10 + $0x68] sm:$0xff]  }
 0x13d   :  { %1332 = vmatpush1.bf16.msra.mxu0 %v2093_v59  ;;  %1375 = vmatpush1.bf16.msra.mxu1 %v2096_v60  ;;  %v2164_v59 = vld [vmem:[#allocation10 + $0x28] sm:$0xff]   ;;  %v2165_v60 = vld [vmem:[#allocation10 + $0x60] sm:$0xff]  }
 0x13e   :  { %1333 = vmatprep.subr.bf16.mxu0 %v2101_v61  ;;  %1376 = vmatprep.subr.bf16.mxu1 %v2104_v62  ;;  %v2166_v61 = vld [vmem:[#allocation10 + $0x20] sm:$0xff]   ;;  %v2167_v62 = vld [vmem:[#allocation10 + $0x58] sm:$0xff]  }
 0x141   :  { %1334 = vmatpush1.bf16.msra.mxu0 %v2099_v63  ;;  %1377 = vmatpush1.bf16.msra.mxu1 %v2102_v0  ;;  %v2168_v63 = vld [vmem:[#allocation10 + $0x18] sm:$0xff]   ;;  %v2169_v0 = vld [vmem:[#allocation10 + $0x50] sm:$0xff]  }
 0x142   :  { %1335 = vmatprep.subr.bf16.mxu0 %v2107_v1  ;;  %1378 = vmatprep.subr.bf16.mxu1 %v2110_v2  ;;  %v2170_v1 = vld [vmem:[#allocation10 + $0x10] sm:$0xff]   ;;  %v2171_v2 = vld [vmem:[#allocation10 + $0x48] sm:$0xff]  }
 0x145   :  { %1336 = vmatpush1.bf16.msra.mxu0 %v2105_v3  ;;  %1379 = vmatpush1.bf16.msra.mxu1 %v2108_v4  ;;  %v2172_v3 = vld [vmem:[#allocation10 + $0x8] sm:$0xff]   ;;  %v2173_v4 = vld [vmem:[#allocation10 + $0x40] sm:$0xff]  }
 0x146   :  { %1337 = vmatprep.subr.bf16.mxu0 %v2113_v6  ;;  %1380 = vmatprep.subr.bf16.mxu1 %v2116_v7  ;;  %v2174_v6 = vld [vmem:[#allocation10] sm:$0xff]   ;;  %v2175_v7 = vld [vmem:[#allocation11 + $0x38] sm:$0xff]  }
 0x149   :  { %1338 = vmatpush2.bf16.msra.mxu0 %v2111_v8  ;;  %1381 = vmatpush2.bf16.msra.mxu1 %v2114_v9  ;;  %v2346_v8 = vmov 0.0   ;;  %v2176_v9 = vld [vmem:[#allocation11 + $0x30] sm:$0xff]  }
 0x14a   :  { %1339 = vmatprep.subr.bf16.mxu0 %v2119_v11  ;;  %1382 = vmatprep.subr.bf16.mxu1 %v2122_v12  ;;  %v2177_v11 = vld [vmem:[#allocation11 + $0x28] sm:$0xff]   ;;  %v2178_v12 = vld [vmem:[#allocation11 + $0x20] sm:$0xff]  }
 0x14d   :  { %1340 = vmatpush2.bf16.msra.mxu0 %v2117_v13  ;;  %1383 = vmatpush2.bf16.msra.mxu1 %v2120_v14 }
 0x14e   :  { %1341 = vmatprep.subr.bf16.mxu0 %v2125_v15  ;;  %1384 = vmatprep.subr.bf16.mxu1 %v2128_v16  ;;  %v583_v16 = vld [vmem:[%s2495_s4] sm:$0x3] }
 0x151   :  { %1342 = vmatpush2.bf16.msra.mxu0 %v2123_v17  ;;  %1385 = vmatpush2.bf16.msra.mxu1 %v2126_v18  ;;  %v592_v18 = vrot.slane %v583_v16, %v141_v40 }
 0x152   :  { %1343 = vmatprep.subr.bf16.mxu0 %v2131_v19  ;;  %1386 = vmatprep.subr.bf16.mxu1 %v2134_v20  ;;  %v588_v19 = vrot.slane %v583_v16, %v137_v41 }
 0x155   :  { %1344 = vmatpush2.bf16.msra.mxu0 %v2129_v21  ;;  %1387 = vmatpush2.bf16.msra.mxu1 %v2132_v22 }
 0x156   :  { %1345 = vmatprep.subr.bf16.mxu0 %v2137_v23  ;;  %1388 = vmatprep.subr.bf16.mxu1 %v2140_v25 }
 0x159   :  { %1346 = vmatpush2.bf16.msra.mxu0 %v2135_v26  ;;  %1389 = vmatpush2.bf16.msra.mxu1 %v2138_v29 }
 0x15a   :  { %1347 = vmatprep.subr.bf16.mxu0 %v2143_v30  ;;  %1390 = vmatprep.subr.bf16.mxu1 %v2146_v32 }
 0x15d   :  { %1348 = vmatpush2.bf16.msra.mxu0 %v2141_v33  ;;  %1391 = vmatpush2.bf16.msra.mxu1 %v2144_v35 }
 0x15e   :  { %1349 = vmatprep.subr.bf16.mxu0 %v2149_v36  ;;  %1392 = vmatprep.subr.bf16.mxu1 %v2152_v38 }
 0x161   :  { %1350 = vmatpush2.bf16.msra.mxu0 %v2147_v42  ;;  %1393 = vmatpush2.bf16.msra.mxu1 %v2150_v46 }
 0x162   :  { %1351 = vmatprep.subr.bf16.mxu0 %v2155_v47  ;;  %1394 = vmatprep.subr.bf16.mxu1 %v2158_v50 }
 0x165   :  { %1352 = vmatpush2.bf16.msra.mxu0 %v2153_v43  ;;  %1395 = vmatpush2.bf16.msra.mxu1 %v2156_v53 }
 0x166   :  { %1900 = vmatprep.subr.bf16.mxu0 %v2159_v10  ;;  %1931 = vmatprep.subr.bf16.mxu1 %v2346_v8  ;;  %v2181_v10 = vld [vmem:[#allocation11 + $0x8] sm:$0xff]  }
 0x168   :  { %1354 = vmatmul.mubr.bf16.vlgmr.msra.gmra.mxu0 %v451_v24  ;;  %1397 = vmatmul.mubr.bf16.vlgmr.msra.gmra.mxu1 %v453_v55  ;;  %v2179_v24 = vld [vmem:[#allocation11 + $0x18] sm:$0xff]   ;;  %v2180_v55 = vld [vmem:[#allocation11 + $0x10] sm:$0xff]  }
 0x169   :  { %1901 = vmatpush3.bf16.msra.mxu0 %v2160_v28  ;;  %1932 = vmatpush3.bf16.msra.mxu1 %v2175_v7  ;;  %v2182_v28 = vld [vmem:[#allocation11] sm:$0xff]  }
 0x16a   :  { %1902 = vmatprep.subr.bf16.mxu0 %v2161_v56  ;;  %1933 = vmatprep.subr.bf16.mxu1 %v2346_v8 }
 0x16b   :  { %1947 = vmatprep.mubr.msk.bf16.mxu1 %vm2347_vm1, %v2346_v8 }
 0x16d   :  { %1903 = vmatpush3.bf16.msra.mxu0 %v2162_v57  ;;  %1934 = vmatpush3.bf16.msra.mxu1 %v2176_v9 }
 0x16e   :  { %1904 = vmatprep.subr.bf16.mxu0 %v2163_v58  ;;  %1935 = vmatprep.subr.bf16.mxu1 %v2346_v8 }
 0x171   :  { %1905 = vmatpush3.bf16.msra.mxu0 %v2164_v59  ;;  %1936 = vmatpush3.bf16.msra.mxu1 %v2177_v11  ;;  %v1874_v59 = vld [vmem:[%s2497_s6] ss:$0 sm:$0xff] }
 0x172   :  { %1906 = vmatprep.subr.bf16.mxu0 %v2165_v60  ;;  %1937 = vmatprep.subr.bf16.mxu1 %v2346_v8 }
 0x175   :  { %1907 = vmatpush3.bf16.msra.mxu0 %v2166_v61  ;;  %1938 = vmatpush3.bf16.msra.mxu1 %v2178_v12 }
 0x176   :  { %1908 = vmatprep.subr.bf16.mxu0 %v2167_v62  ;;  %1939 = vmatprep.subr.bf16.mxu1 %v2346_v8 }
 0x179   :  { %1909 = vmatpush3.bf16.msra.mxu0 %v2168_v63  ;;  %1940 = vmatpush3.bf16.msra.mxu1 %v2179_v24 }
 0x17a   :  { %1910 = vmatprep.subr.bf16.mxu0 %v2169_v0  ;;  %1941 = vmatprep.subr.bf16.mxu1 %v2346_v8 }
 0x17d   :  { %1911 = vmatpush3.bf16.msra.mxu0 %v2170_v1  ;;  %1942 = vmatpush3.bf16.msra.mxu1 %v2180_v55 }
 0x17e   :  { %1912 = vmatprep.subr.bf16.mxu0 %v2171_v2  ;;  %1943 = vmatprep.subr.bf16.mxu1 %v2346_v8 }
 0x181   :  { %1913 = vmatpush3.bf16.msra.mxu0 %v2172_v3  ;;  %1944 = vmatpush3.bf16.msra.mxu1 %v2181_v10 }
 0x182   :  { %1914 = vmatprep.subr.bf16.mxu0 %v2173_v4  ;;  %1945 = vmatprep.subr.bf16.mxu1 %v2346_v8  ;;  %v1891_v4 = vld [vmem:[%s2499_s8] ss:$0 sm:$0xff] }
 0x185   :  { %1915 = vmatpush3.bf16.msra.mxu0 %v2174_v6  ;;  %1946 = vmatpush3.bf16.msra.mxu1 %v2182_v28 }
 0x1e8   :  { %v1269_v13 = vpop.f32.mrf.mxu0  ;;  %v1312_v14 = vpop.f32.mrf.mxu1 }
 0x1e9   :  { %v1270_v23 = vadd.f32 %v1269_v13, %v588_v19 }
 0x1ea   :  { %v1271_v15 = vpop.f32.mrf.mxu0  ;;  %v1314_v17 = vpop.f32.mrf.mxu1 }
 0x1eb   :  { %v1272_v22 = vadd.f32 %v1271_v15, %v592_v18  ;;  %v1313_v33 = vadd.f32 %v1312_v14, %v1270_v23 }
 0x1ec   :  { %v1273_v20 = vpop.f32.mrf.mxu0  ;;  %v1316_v21 = vpop.f32.mrf.mxu1 }
 0x1ed   :  { %v1274_v26 = vadd.f32 %v1273_v20, %v588_v19  ;;  %v1315_v30 = vadd.f32 %v1314_v17, %v1272_v22 }
 0x1ee   :  { %v1275_v25 = vpop.f32.mrf.mxu0  ;;  %v1318_v27 = vpop.f32.mrf.mxu1 }
 0x1ef   :  { %v1276_v31 = vadd.f32 %v1275_v25, %v592_v18  ;;  %v1317_v35 = vadd.f32 %v1316_v21, %v1274_v26 }
 0x1f1   :  { %v1319_v39 = vadd.f32 %v1318_v27, %v1276_v31 }
 0x228   :  { %v1355_v29 = vpop.f32.mrf.mxu0  ;;  %v1398_v32 = vpop.f32.mrf.mxu1 }
 0x229   :  { %v1356_v40 = vadd.f32 %v1355_v29, %v1313_v33 }
 0x22a   :  { %v1357_v34 = vpop.f32.mrf.mxu0  ;;  %v1400_v37 = vpop.f32.mrf.mxu1 }
 0x22b   :  { %v1358_v36 = vadd.f32 %v1357_v34, %v1315_v30  ;;  %v1399_v48 = vadd.f32 %v1398_v32, %v1356_v40 }
 0x22c   :  { %v1359_v38 = vpop.f32.mrf.mxu0  ;;  %v1402_v42 = vpop.f32.mrf.mxu1 }
 0x22d   :  { %v1360_v41 = vadd.f32 %v1359_v38, %v1317_v35  ;;  %v1401_v45 = vadd.f32 %v1400_v37, %v1358_v36  ;;  %v1407_v53 = vmax.f32 %v1399_v48, 0.0 }
 0x22e   :  { %v1361_v44 = vpop.f32.mrf.mxu0  ;;  %v1404_v49 = vpop.f32.mrf.mxu1 }
 0x22f   :  { %v1403_v46 = vadd.f32 %v1402_v42, %v1360_v41  ;;  %v1362_v47 = vadd.f32 %v1361_v44, %v1319_v39  ;;  %v1408_v51 = vmax.f32 %v1401_v45, 0.0 }
 0x231   :  { %v1405_v50 = vadd.f32 %v1404_v49, %v1362_v47  ;;  %v1409_v43 = vmax.f32 %v1403_v46, 0.0 }
 0x233   :  { %v1410_v52 = vmax.f32 %v1405_v50, 0.0  ;;  %v1411_v54 = vpack.c.bf16 %v1409_v43, %v1407_v53 }
 0x235   :  { %v1412_v5 = vpack.c.bf16 %v1410_v52, %v1408_v51 }
 0x237   :  { %1580 = vmatprep.mubr.bf16.mxu0 %v1412_v5 }
 0x238   :  { %1581 = vmatmul.mubr.bf16.vlgmr.msra.gmra.mxu0 %v1411_v54 }
 0x2f8   :  { %v1916_v56 = vpop.f32.mrf.mxu0 }
 0x2fa   :  { %v1917_v57 = vpop.f32.mrf.mxu0 }
 0x2fb   :  { %v1918_v58 = vadd.f32 %v1917_v57, %v1916_v56 }
 0x2fc   :  { %v1919_v60 = vpop.f32.mrf.mxu0 }
 0x2fd   :  { %v1583_v62 = vadd.f32 %v1918_v58, %v1874_v59 }
 0x2fe   :  { %v1920_v61 = vpop.f32.mrf.mxu0 }
 0x2ff   :  { %v1921_v63 = vadd.f32 %v1920_v61, %v1919_v60  ;;  %v1589_v1 = vmax.f32 %v1583_v62, 0.0 }
 0x301   :  { %v1586_v0 = vadd.f32 %v1921_v63, %v1874_v59 }
 0x303   :  { %v1590_v2 = vmax.f32 %v1586_v0, 0.0 }
 0x305   :  { %v1591_v3 = vpack.c.bf16 %v1590_v2, %v1589_v1 }
 0x307   :  { %1948 = vmatmul.mubr.bf16.vlgmr.msra.gmra.mxu1 %v1591_v3 }
 0x3c7   :  { %v1697_v6 = vpop.f32.mrf.mxu1 }
 0x3c8   :  { %v1698_v7 = vadd.f32 %v1891_v4, %v1697_v6 }
 0x3c9   :  { %v1949_v8 = vpop.f32.mrf.mxu1 }
 0x3ca   :  { %1704 = vst [vmem:[#allocation13] sm:$0xff] %v1698_v7 }
 0x3cb   :  { %v1700_v9 = vpop.f32.mrf.mxu1 }
 0x3cc   :  { %v1701_v11 = vadd.f32 %v1891_v4, %v1700_v9 }
 0x3cd   :  { %v1950_v12 = vpop.f32.mrf.mxu1 }
 0x3ce   :  { %1705 = vst [vmem:[#allocation13 + $0x8] sm:$0xff] %v1701_v11 }
 0x3cf   :  { %1710 = vsyncadd [#allocation4], 128  ;;  %s2348_s6 = smov [#allocation13]  }
 0x3d0   :  { %s1711_s25 = sshll.u32 %s2348_s6, 4  ;;  %s1712_s25 = int_to_ptr.vmem [resolvable:$true] %s1711_s25 }
 0x3d1   :  { %s2303_s26 = scalar_lea.vmem %s1712_s25, 128  ;;  %s2307_s27 = scalar_lea.vmem %s1712_s25, 256 }
 0x3d2   :  { %p2304_p2 = scmp.ne.s32.totalorder %s1712_s25, %s2303_s26  ;;  %p2308_p3 = scmp.lt.s32.totalorder %s1712_s25, %s1712_s25 }
 0x3d3   :  { %p2309_p4 = scmp.lt.s32.totalorder %s2307_s27, %s2303_s26 }
 0x3d5   :  { %p2310_p5 = por %p2309_p4, %p2308_p3 }
 0x3d7   :  { %p2311_p6 = pnand %p2310_p5, %p2304_p2 }
 0x3d9   :  { %2314 = shalt.err (!%p2311_p6)
}
 0x3da   :  { %1717 = dma.vmem_to_hbm [thread:$0]  %s1712_s25, 128, %s2500_s9, [#allocation4], %s2338_s21, %s2338_s21, %s2339_s22  }
 0x3db   :  { %2331 = dma.done.wait [#allocation4], 256  }
 0x3dc   :  { %2332 = vsyncadd [#allocation4], 4294967040 }
 0x3dd   :  { %1721 = vsyncpa [#allocation3], 1 }
 0x3de   :  { %1722 = vsyncpa [#allocation6], 1 }
 0x3df   :  { %1723 = vsyncpa [#allocation9], 1 }
 0x3e0   :  { %1724 = vsyncpa [#allocation12], 1 }
 0x3e1   :  { %1725 = vsyncpa [#allocation4], 1 }

</bundles_post_ra>
